<compile_context>
chip_gen: v7x
topology: tpu7x:2x2x1
jax: 0.10.0
libtpu: 0.0.40
codegen_flags: <defaults>
</compile_context>

<pallas_src>
import math
import functools
from typing import NamedTuple

import jax
import jax.numpy as jnp
from jax import lax
from jax.experimental import pallas as pl
from jax.experimental.pallas import tpu as pltpu

_MIB = 1024 * 1024


def _round_up(x, m):
    return ((x + m - 1) // m) * m


def _sublane(dtype):
    # sublane packing of the (8,128) f32 tile: 16 rows for 2-byte, 32 for 1-byte
    return {1: 32, 2: 16, 4: 8}.get(jnp.dtype(dtype).itemsize, 8)


def _tpu_caps():
    """(physical per-core VMEM bytes, TensorCores per chip) -- defensive."""
    vmem = 128 * _MIB
    cores = 1
    try:
        info = pltpu.get_tpu_info()
        vmem = int(getattr(info, "vmem_capacity_bytes", vmem))
    except Exception:
        pass
    try:
        kind = jax.devices()[0].device_kind.lower()
        if "v7" in kind:
            cores = 2
    except Exception:
        pass
    if vmem <= 64 * _MIB:          # v7x-class: 64 MiB per TC, 2 TCs per chip
        cores = max(cores, 2)
    return vmem, cores


class AdapterParams(NamedTuple):
    w_down: jax.Array   # (Dp, Hp), zero padded
    b_down: jax.Array   # (1, Hp), f32, zero padded
    w_up: jax.Array     # (Hp, Dp), zero padded
    b_up: jax.Array     # (1, Dp), f32, zero padded
    gamma: jax.Array    # (1, Dp), f32, zero padded (padded lanes -> 0 output)
    beta: jax.Array     # (1, Dp), f32, zero padded
    d_model: int        # true D
    bottleneck: int     # true H


def prepare_adapter_params(w_down, b_down, w_up, b_up, gamma, beta):
    """One-time padding / casting, hoisted out of the per-call wrapper."""
    D, H = w_down.shape
    Hp = max(128, _round_up(H, 128))
    Dp = max(128, _round_up(D, 128))

    b_down = jnp.asarray(b_down).reshape(1, H)
    b_up = jnp.asarray(b_up).reshape(1, D)
    gamma = jnp.asarray(gamma).reshape(1, D)
    beta = jnp.asarray(beta).reshape(1, D)

    if Hp != H:   # exact: zero bias -> ReLU(0)=0 -> zero w_up rows contribute 0
        w_down = jnp.pad(w_down, ((0, 0), (0, Hp - H)))
        b_down = jnp.pad(b_down, ((0, 0), (0, Hp - H)))
        w_up = jnp.pad(w_up, ((0, Hp - H), (0, 0)))
    if Dp != D:   # exact: gamma/beta zero-padded -> LN output padded lanes are 0
        w_down = jnp.pad(w_down, ((0, Dp - D), (0, 0)))
        w_up = jnp.pad(w_up, ((0, 0), (0, Dp - D)))
        b_up = jnp.pad(b_up, ((0, 0), (0, Dp - D)))
        gamma = jnp.pad(gamma, ((0, 0), (0, Dp - D)))
        beta = jnp.pad(beta, ((0, 0), (0, Dp - D)))

    return AdapterParams(w_down, b_down.astype(jnp.float32), w_up,
                         b_up.astype(jnp.float32), gamma.astype(jnp.float32),
                         beta.astype(jnp.float32), int(D), int(H))


def _adapter_kernel(*refs, scale, eps, d_model, has_residual, add_residual):
    if has_residual:
        (x_ref, res_ref, wd_ref, bd_ref, wu_ref, bu_ref,
         g_ref, bta_ref, o_ref) = refs
    else:
        (x_ref, wd_ref, bd_ref, wu_ref, bu_ref,
         g_ref, bta_ref, o_ref) = refs
        res_ref = None

    x = x_ref[...].astype(jnp.float32)          # padded feature lanes are zero

    # --- LayerNorm('in'): one-pass stats over the TRUE feature count.
    # Padded lanes are zero so sum(x) and sum(x*x) are exact.
    inv_d = 1.0 / float(d_model)
    mu = jnp.sum(x, axis=-1, keepdims=True) * inv_d
    ex2 = jnp.sum(x * x, axis=-1, keepdims=True) * inv_d
    var = ex2 - mu * mu
    xn = (x - mu) * lax.rsqrt(var + eps)
    xn = xn * g_ref[...] + bta_ref[...]         # zero-padded gamma/beta -> 0 lanes

    # --- down_proj: (TM, Dp) @ (Dp, Hp) + b_down, native-dtype MXU path ---
    wd = wd_ref[...]
    lhs = xn if wd.dtype == jnp.float32 else xn.astype(wd.dtype)
    down = jnp.dot(lhs, wd, preferred_element_type=jnp.float32)
    down = jnp.maximum(down + bd_ref[...], 0.0)   # ReLU
    # TODO(synk): training-mode dropout (p > 0) would need pltpu.prng_* masking;
    # p = 0.0 (eval) is the identity.

    # --- up_proj: (TM, Hp) @ (Hp, Dp) + b_up, then scale ---
    wu = wu_ref[...]
    lhs2 = down if wu.dtype == jnp.float32 else down.astype(wu.dtype)
    up = jnp.dot(lhs2, wu, preferred_element_type=jnp.float32)
    up = (up + bu_ref[...]) * scale
    # TODO(synk): adapter_layernorm_option == 'out' (LN after scaling) not implemented.

    if add_residual:
        res = res_ref[...].astype(jnp.float32) if has_residual else x  # reuse x
        up = up + res
    o_ref[...] = up.astype(o_ref.dtype)


def adapter_forward(x, params: AdapterParams, *, residual=None,
                    add_residual=True, scale=1.0, eps=1e-5, tile_m=512):
    """x: (N, D) rows (N = B*S). params from prepare_adapter_params()."""
    N, D = x.shape
    assert D == params.d_model, "x feature dim must match prepared params"
    Dp, Hp = params.w_down.shape
    act_item = jnp.dtype(x.dtype).itemsize
    w_item = jnp.dtype(params.w_down.dtype).itemsize

    has_residual = (residual is not None) and add_residual

    # --- generation-aware VMEM budget ---
    vmem_phys, num_cores = _tpu_caps()
    vmem_cap = int(vmem_phys * 0.8)
    vmem_cap = min(vmem_cap, 52 * _MIB if vmem_phys <= 64 * _MIB else 104 * _MIB)

    n_row_streams = 2 + (1 if has_residual else 0)        # x, out, (residual)
    per_row = 2 * n_row_streams * Dp * act_item + 4 * (3 * Dp + Hp)
    w_bytes = (Dp * Hp + Hp * Dp) * w_item + 4 * (2 * Dp + Hp)

    def footprint(tm):
        return 2 * w_bytes + tm * per_row + 8 * _MIB      # conservative

    # --- row tiling: biggest tile that fits the VMEM budget ---
    sub = _sublane(x.dtype)
    tm = max(sub, _round_up(min(int(tile_m), _round_up(N, sub)), sub))
    while tm > sub and footprint(tm) > vmem_cap:
        tm = max(sub, _round_up(tm // 2, sub))
    # Multi-TC chips: >= 2 grid steps per core so DMA pipelines behind compute.
    # Single-TC chips: never split a small N (pure per-step overhead).
    if num_cores > 1:
        want = _round_up(-(-N // (2 * num_cores)), sub)
        tm = max(sub, min(tm, want))
    N_pad = _round_up(N, tm)
    vmem_limit = int(min(max(footprint(tm), 32 * _MIB), vmem_cap))

    # --- pad activations only (params were padded once in prepare_*) ---
    pad_n, pad_d = N_pad - N, Dp - D
    if pad_n or pad_d:
        x = jnp.pad(x, ((0, pad_n), (0, pad_d)))
        if has_residual:
            residual = jnp.pad(residual, ((0, pad_n), (0, pad_d)))
    if has_residual and residual.dtype != x.dtype:
        residual = residual.astype(x.dtype)

    kernel = functools.partial(_adapter_kernel, scale=float(scale),
                               eps=float(eps), d_model=D,
                               has_residual=has_residual,
                               add_residual=add_residual)

    row_spec = pl.BlockSpec((tm, Dp), lambda i: (i, 0))
    flops = 4 * N_pad * Dp * Hp
    bytes_accessed = (n_row_streams * N_pad * Dp * act_item
                      + (Dp * Hp + Hp * Dp) * w_item)

    def _call(single_buffer_consts):
        if single_buffer_consts:
            const = lambda shape: pl.BlockSpec(shape, lambda i: (0, 0),
                                               pipeline_mode=pl.Buffered(1))
        else:
            const = lambda shape: pl.BlockSpec(shape, lambda i: (0, 0))

        in_specs = [row_spec]
        operands = [x]
        io_alias = {}
        if has_residual:
            in_specs.append(row_spec)
            operands.append(residual)
            io_alias = {1: 0}       # reuse the residual HBM buffer for the output
        in_specs += [const((Dp, Hp)), const((1, Hp)),     # w_down, b_down
                     const((Hp, Dp)), const((1, Dp)),     # w_up,   b_up
                     const((1, Dp)), const((1, Dp))]      # gamma,  beta
        operands += [params.w_down, params.b_down, params.w_up, params.b_up,
                     params.gamma, params.beta]

        return pl.pallas_call(
            kernel,
            out_shape=jax.ShapeDtypeStruct((N_pad, Dp), x.dtype),
            grid_spec=pltpu.PrefetchScalarGridSpec(
                num_scalar_prefetch=0,
                grid=(N_pad // tm,),
                in_specs=in_specs,
                out_specs=row_spec,
            ),
            input_output_aliases=io_alias,
            compiler_params=pltpu.CompilerParams(
                dimension_semantics=("parallel",),
                vmem_limit_bytes=vmem_limit),
            cost_estimate=pl.CostEstimate(flops=flops,
                                          transcendentals=N_pad,
                                          bytes_accessed=bytes_accessed),
        )(*operands)

    try:
        out = _call(True)
    except Exception:
        out = _call(False)   # fallback if single-buffered const specs unsupported

    if pad_n or pad_d:
        out = out[:N, :D]
    return out


def _reference(x, residual, w_down, b_down, w_up, b_up, gamma, beta,
               scale=1.0, eps=1e-5):
    xf = x.astype(jnp.float32)
    mu = jnp.mean(xf, axis=-1, keepdims=True)
    var = jnp.mean((xf - mu) ** 2, axis=-1, keepdims=True)
    xn = (xf - mu) / jnp.sqrt(var + eps) * gamma + beta
    down = jnp.maximum(xn @ w_down + b_down, 0.0)
    up = (down @ w_up + b_up) * scale
    return up + residual.astype(jnp.float32)


if __name__ == "__main__":
    # Small shapes consistent with the module: batch=2, seq=8, d_model=32,
    # bottleneck=64 (down_proj hard-codes 64 output features).
    B, S, D, H = 2, 8, 32, 64
    key = jax.random.PRNGKey(0)
    kx, kr, kwd, kwu = jax.random.split(key, 4)

    x = jax.random.normal(kx, (B, S, D), dtype=jnp.float32)
    res = jax.random.normal(kr, (B, S, D), dtype=jnp.float32)

    # Deterministic parameter init (kaiming_uniform(a=sqrt(5)) -> U(-1/sqrt(D), 1/sqrt(D));
    # 'lora' init zeroes up_proj, so use a small random up_proj to compute something).
    bound = 1.0 / math.sqrt(D)
    w_down = jax.random.uniform(kwd, (D, H), minval=-bound, maxval=bound,
                                dtype=jnp.float32)
    b_down = jnp.zeros((1, H), jnp.float32)
    w_up = 0.02 * jax.random.normal(kwu, (H, D), dtype=jnp.float32)
    b_up = jnp.zeros((1, D), jnp.float32)
    gamma = jnp.ones((1, D), jnp.float32)    # LayerNorm weight
    beta = jnp.zeros((1, D), jnp.float32)    # LayerNorm bias
    scale = 1.0                              # adapter_scalar='1.0'

    x2d = x.reshape(B * S, D)
    res2d = res.reshape(B * S, D)

    # References computed up-front (kernel output aliases the residual buffer).
    ref1 = _reference(x2d, x2d, w_down, b_down, w_up, b_up, gamma, beta, scale)
    ref2 = _reference(x2d, res2d, w_down, b_down, w_up, b_up, gamma, beta, scale)

    # One-time parameter preparation (padding / casts hoisted out of forward).
    params_f32 = prepare_adapter_params(w_down, b_down, w_up, b_up, gamma, beta)

    # 1) f32, residual defaults to x (duplicate residual stream elided in-kernel).
    out1 = adapter_forward(x2d, params_f32, scale=scale)
    jax.block_until_ready(out1)
    assert jnp.allclose(out1, ref1, atol=1e-4, rtol=1e-4), "f32 (residual=x) mismatch"

    # 2) f32, explicit residual (output aliased onto the residual buffer).
    out2 = adapter_forward(x2d, params_f32, residual=res2d, scale=scale)
    jax.block_until_ready(out2)
    assert jnp.allclose(out2, ref2, atol=1e-4, rtol=1e-4), "f32 (explicit residual) mismatch"

    # 3) bf16 end-to-end (activations, weights, output) -- native MXU fast path;
    #    LN statistics and matmul accumulation stay in f32.
    xb = x2d.astype(jnp.bfloat16)
    wdb = w_down.astype(jnp.bfloat16)
    wub = w_up.astype(jnp.bfloat16)
    params_bf16 = prepare_adapter_params(wdb, b_down, wub, b_up, gamma, beta)
    out3 = adapter_forward(xb, params_bf16, scale=scale)
    jax.block_until_ready(out3)
    ref3 = _reference(xb.astype(jnp.float32), xb.astype(jnp.float32),
                      wdb.astype(jnp.float32), b_down,
                      wub.astype(jnp.float32), b_up, gamma, beta, scale)
    assert jnp.allclose(out3.astype(jnp.float32), ref3, atol=5e-2, rtol=5e-2), \
        "bf16 mismatch"

    print("KERNEL_OK")
</pallas_src>

<mosaic_0001>
module attributes {stable_mosaic.version = 11 : i64} {
  func.func @_adapter_kernel(%arg0: i32, %arg1: memref<16x128xf32, #tpu.memory_space<vmem>>, %arg2: memref<128x128xf32, #tpu.memory_space<vmem>>, %arg3: memref<1x128xf32, #tpu.memory_space<vmem>>, %arg4: memref<128x128xf32, #tpu.memory_space<vmem>>, %arg5: memref<1x128xf32, #tpu.memory_space<vmem>>, %arg6: memref<1x128xf32, #tpu.memory_space<vmem>>, %arg7: memref<1x128xf32, #tpu.memory_space<vmem>>, %arg8: memref<16x128xf32, #tpu.memory_space<vmem>>) attributes {dimension_semantics = [#tpu.dimension_semantics<parallel>], iteration_bounds = array<i64: 1>, scalar_prefetch = 0 : i64, scratch_operands = 0 : i64, tpu.core_type = #tpu.core_type<tc>, window_params = [{transform_indices = @transform_0, window_bounds = array<i64: 16, 128>}, {pipeline_mode = #tpu.pipeline_mode<synchronous>, transform_indices = @transform_1, window_bounds = array<i64: 128, 128>}, {pipeline_mode = #tpu.pipeline_mode<synchronous>, transform_indices = @transform_2, window_bounds = array<i64: 1, 128>}, {pipeline_mode = #tpu.pipeline_mode<synchronous>, transform_indices = @transform_3, window_bounds = array<i64: 128, 128>}, {pipeline_mode = #tpu.pipeline_mode<synchronous>, transform_indices = @transform_4, window_bounds = array<i64: 1, 128>}, {pipeline_mode = #tpu.pipeline_mode<synchronous>, transform_indices = @transform_5, window_bounds = array<i64: 1, 128>}, {pipeline_mode = #tpu.pipeline_mode<synchronous>, transform_indices = @transform_6, window_bounds = array<i64: 1, 128>}, {transform_indices = @transform_7, window_bounds = array<i64: 16, 128>}]} {
    %c0 = arith.constant 0 : index
    %c0_0 = arith.constant 0 : index
    %0 = vector.load %arg1[%c0, %c0_0] : memref<16x128xf32, #tpu.memory_space<vmem>>, vector<16x128xf32>
    %cst = arith.constant dense<0.000000e+00> : vector<16xf32>
    %1 = vector.multi_reduction <add>, %0, %cst [1] : vector<16x128xf32> to vector<16xf32>
    %2 = vector.shape_cast %1 : vector<16xf32> to vector<16x1xf32>
    %cst_1 = arith.constant 3.125000e-02 : f32
    %3 = vector.broadcast %cst_1 : f32 to vector<16x1xf32>
    %4 = arith.mulf %2, %3 : vector<16x1xf32>
    %5 = arith.mulf %0, %0 : vector<16x128xf32>
    %cst_2 = arith.constant dense<0.000000e+00> : vector<16xf32>
    %6 = vector.multi_reduction <add>, %5, %cst_2 [1] : vector<16x128xf32> to vector<16xf32>
    %7 = vector.shape_cast %6 : vector<16xf32> to vector<16x1xf32>
    %cst_3 = arith.constant 3.125000e-02 : f32
    %8 = vector.broadcast %cst_3 : f32 to vector<16x1xf32>
    %9 = arith.mulf %7, %8 : vector<16x1xf32>
    %10 = arith.mulf %4, %4 : vector<16x1xf32>
    %11 = arith.subf %9, %10 : vector<16x1xf32>
    %12 = vector.broadcast %4 : vector<16x1xf32> to vector<16x128xf32>
    %13 = arith.subf %0, %12 : vector<16x128xf32>
    %cst_4 = arith.constant 9.99999974E-6 : f32
    %14 = vector.broadcast %cst_4 : f32 to vector<16x1xf32>
    %15 = arith.addf %11, %14 : vector<16x1xf32>
    %16 = math.rsqrt %15 : vector<16x1xf32>
    %17 = vector.broadcast %16 : vector<16x1xf32> to vector<16x128xf32>
    %18 = arith.mulf %13, %17 : vector<16x128xf32>
    %c0_5 = arith.constant 0 : index
    %c0_6 = arith.constant 0 : index
    %19 = vector.load %arg6[%c0_5, %c0_6] : memref<1x128xf32, #tpu.memory_space<vmem>>, vector<1x128xf32>
    %20 = vector.broadcast %19 : vector<1x128xf32> to vector<16x128xf32>
    %21 = arith.mulf %18, %20 : vector<16x128xf32>
    %c0_7 = arith.constant 0 : index
    %c0_8 = arith.constant 0 : index
    %22 = vector.load %arg7[%c0_7, %c0_8] : memref<1x128xf32, #tpu.memory_space<vmem>>, vector<1x128xf32>
    %23 = vector.broadcast %22 : vector<1x128xf32> to vector<16x128xf32>
    %24 = arith.addf %21, %23 : vector<16x128xf32>
    %c0_9 = arith.constant 0 : index
    %c0_10 = arith.constant 0 : index
    %25 = vector.load %arg2[%c0_9, %c0_10] : memref<128x128xf32, #tpu.memory_space<vmem>>, vector<128x128xf32>
    %cst_11 = arith.constant dense<0.000000e+00> : vector<16x128xf32>
    %26 = tpu.matmul %24, %25, %cst_11 {dimension_numbers = #tpu.dot_dimension_numbers<[1], [0], [0], [1], [0, 0, 1, 1], [], []>} : vector<16x128xf32>, vector<128x128xf32>, vector<16x128xf32> -> vector<16x128xf32>
    %c0_12 = arith.constant 0 : index
    %c0_13 = arith.constant 0 : index
    %27 = vector.load %arg3[%c0_12, %c0_13] : memref<1x128xf32, #tpu.memory_space<vmem>>, vector<1x128xf32>
    %28 = vector.broadcast %27 : vector<1x128xf32> to vector<16x128xf32>
    %29 = arith.addf %26, %28 : vector<16x128xf32>
    %cst_14 = arith.constant 0.000000e+00 : f32
    %30 = vector.broadcast %cst_14 : f32 to vector<16x128xf32>
    %31 = arith.maximumf %29, %30 : vector<16x128xf32>
    %c0_15 = arith.constant 0 : index
    %c0_16 = arith.constant 0 : index
    %32 = vector.load %arg4[%c0_15, %c0_16] : memref<128x128xf32, #tpu.memory_space<vmem>>, vector<128x128xf32>
    %cst_17 = arith.constant dense<0.000000e+00> : vector<16x128xf32>
    %33 = tpu.matmul %31, %32, %cst_17 {dimension_numbers = #tpu.dot_dimension_numbers<[1], [0], [0], [1], [0, 0, 1, 1], [], []>} : vector<16x128xf32>, vector<128x128xf32>, vector<16x128xf32> -> vector<16x128xf32>
    %c0_18 = arith.constant 0 : index
    %c0_19 = arith.constant 0 : index
    %34 = vector.load %arg5[%c0_18, %c0_19] : memref<1x128xf32, #tpu.memory_space<vmem>>, vector<1x128xf32>
    %35 = vector.broadcast %34 : vector<1x128xf32> to vector<16x128xf32>
    %36 = arith.addf %33, %35 : vector<16x128xf32>
    %cst_20 = arith.constant 1.000000e+00 : f32
    %37 = vector.broadcast %cst_20 : f32 to vector<16x128xf32>
    %38 = arith.mulf %36, %37 : vector<16x128xf32>
    %39 = arith.addf %38, %0 : vector<16x128xf32>
    %c0_21 = arith.constant 0 : index
    %c0_22 = arith.constant 0 : index
    %40 = vector.load %arg8[%c0_21, %c0_22] : memref<16x128xf32, #tpu.memory_space<vmem>>, vector<16x128xf32>
    tpu.vector_store %arg8[%c0_21, %c0_22], %39 {strides = array<i32>} : memref<16x128xf32, #tpu.memory_space<vmem>>, vector<16x128xf32>,
    return
  }
  func.func @transform_0(%arg0: i32) -> (i32, i32) {
    %c0_i32 = arith.constant 0 : i32
    %c0_i32_0 = arith.constant 0 : i32
    return %arg0, %c0_i32 : i32, i32
  }
  func.func @transform_1(%arg0: i32) -> (i32, i32) {
    %c0_i32 = arith.constant 0 : i32
    %c0_i32_0 = arith.constant 0 : i32
    %c0_i32_1 = arith.constant 0 : i32
    return %c0_i32, %c0_i32_0 : i32, i32
  }
  func.func @transform_2(%arg0: i32) -> (i32, i32) {
    %c0_i32 = arith.constant 0 : i32
    %c0_i32_0 = arith.constant 0 : i32
    %c0_i32_1 = arith.constant 0 : i32
    return %c0_i32, %c0_i32_0 : i32, i32
  }
  func.func @transform_3(%arg0: i32) -> (i32, i32) {
    %c0_i32 = arith.constant 0 : i32
    %c0_i32_0 = arith.constant 0 : i32
    %c0_i32_1 = arith.constant 0 : i32
    return %c0_i32, %c0_i32_0 : i32, i32
  }
  func.func @transform_4(%arg0: i32) -> (i32, i32) {
    %c0_i32 = arith.constant 0 : i32
    %c0_i32_0 = arith.constant 0 : i32
    %c0_i32_1 = arith.constant 0 : i32
    return %c0_i32, %c0_i32_0 : i32, i32
  }
  func.func @transform_5(%arg0: i32) -> (i32, i32) {
    %c0_i32 = arith.constant 0 : i32
    %c0_i32_0 = arith.constant 0 : i32
    %c0_i32_1 = arith.constant 0 : i32
    return %c0_i32, %c0_i32_0 : i32, i32
  }
  func.func @transform_6(%arg0: i32) -> (i32, i32) {
    %c0_i32 = arith.constant 0 : i32
    %c0_i32_0 = arith.constant 0 : i32
    %c0_i32_1 = arith.constant 0 : i32
    return %c0_i32, %c0_i32_0 : i32, i32
  }
  func.func @transform_7(%arg0: i32) -> (i32, i32) {
    %c0_i32 = arith.constant 0 : i32
    %c0_i32_0 = arith.constant 0 : i32
    return %arg0, %c0_i32 : i32, i32
  }
}

module attributes {stable_mosaic.version = 11 : i64} {
  func.func @_adapter_kernel(%arg0: i32, %arg1: memref<16x128xf32, #tpu.memory_space<vmem>>, %arg2: memref<128x128xf32, #tpu.memory_space<vmem>>, %arg3: memref<1x128xf32, #tpu.memory_space<vmem>>, %arg4: memref<128x128xf32, #tpu.memory_space<vmem>>, %arg5: memref<1x128xf32, #tpu.memory_space<vmem>>, %arg6: memref<1x128xf32, #tpu.memory_space<vmem>>, %arg7: memref<1x128xf32, #tpu.memory_space<vmem>>, %arg8: memref<16x128xf32, #tpu.memory_space<vmem>>) attributes {dimension_semantics = [#tpu.dimension_semantics<parallel>], iteration_bounds = array<i64: 1>, scalar_prefetch = 0 : i64, scratch_operands = 0 : i64, tpu.core_type = #tpu.core_type<tc>, window_params = [{transform_indices = @transform_0, window_bounds = array<i64: 16, 128>}, {pipeline_mode = #tpu.pipeline_mode<synchronous>, transform_indices = @transform_1, window_bounds = array<i64: 128, 128>}, {pipeline_mode = #tpu.pipeline_mode<synchronous>, transform_indices = @transform_2, window_bounds = array<i64: 1, 128>}, {pipeline_mode = #tpu.pipeline_mode<synchronous>, transform_indices = @transform_3, window_bounds = array<i64: 128, 128>}, {pipeline_mode = #tpu.pipeline_mode<synchronous>, transform_indices = @transform_4, window_bounds = array<i64: 1, 128>}, {pipeline_mode = #tpu.pipeline_mode<synchronous>, transform_indices = @transform_5, window_bounds = array<i64: 1, 128>}, {pipeline_mode = #tpu.pipeline_mode<synchronous>, transform_indices = @transform_6, window_bounds = array<i64: 1, 128>}, {transform_indices = @transform_7, window_bounds = array<i64: 16, 128>}]} {
    %c0 = arith.constant 0 : index
    %c0_0 = arith.constant 0 : index
    %0 = vector.load %arg1[%c0, %c0_0] : memref<16x128xf32, #tpu.memory_space<vmem>>, vector<16x128xf32>
    %cst = arith.constant dense<0.000000e+00> : vector<16xf32>
    %1 = vector.multi_reduction <add>, %0, %cst [1] : vector<16x128xf32> to vector<16xf32>
    %2 = vector.shape_cast %1 : vector<16xf32> to vector<16x1xf32>
    %cst_1 = arith.constant 3.125000e-02 : f32
    %3 = vector.broadcast %cst_1 : f32 to vector<16x1xf32>
    %4 = arith.mulf %2, %3 : vector<16x1xf32>
    %5 = arith.mulf %0, %0 : vector<16x128xf32>
    %cst_2 = arith.constant dense<0.000000e+00> : vector<16xf32>
    %6 = vector.multi_reduction <add>, %5, %cst_2 [1] : vector<16x128xf32> to vector<16xf32>
    %7 = vector.shape_cast %6 : vector<16xf32> to vector<16x1xf32>
    %cst_3 = arith.constant 3.125000e-02 : f32
    %8 = vector.broadcast %cst_3 : f32 to vector<16x1xf32>
    %9 = arith.mulf %7, %8 : vector<16x1xf32>
    %10 = arith.mulf %4, %4 : vector<16x1xf32>
    %11 = arith.subf %9, %10 : vector<16x1xf32>
    %12 = vector.broadcast %4 : vector<16x1xf32> to vector<16x128xf32>
    %13 = arith.subf %0, %12 : vector<16x128xf32>
    %cst_4 = arith.constant 9.99999974E-6 : f32
    %14 = vector.broadcast %cst_4 : f32 to vector<16x1xf32>
    %15 = arith.addf %11, %14 : vector<16x1xf32>
    %16 = math.rsqrt %15 : vector<16x1xf32>
    %17 = vector.broadcast %16 : vector<16x1xf32> to vector<16x128xf32>
    %18 = arith.mulf %13, %17 : vector<16x128xf32>
    %c0_5 = arith.constant 0 : index
    %c0_6 = arith.constant 0 : index
    %19 = vector.load %arg6[%c0_5, %c0_6] : memref<1x128xf32, #tpu.memory_space<vmem>>, vector<1x128xf32>
    %20 = vector.broadcast %19 : vector<1x128xf32> to vector<16x128xf32>
    %21 = arith.mulf %18, %20 : vector<16x128xf32>
    %c0_7 = arith.constant 0 : index
    %c0_8 = arith.constant 0 : index
    %22 = vector.load %arg7[%c0_7, %c0_8] : memref<1x128xf32, #tpu.memory_space<vmem>>, vector<1x128xf32>
    %23 = vector.broadcast %22 : vector<1x128xf32> to vector<16x128xf32>
    %24 = arith.addf %21, %23 : vector<16x128xf32>
    %c0_9 = arith.constant 0 : index
    %c0_10 = arith.constant 0 : index
    %25 = vector.load %arg2[%c0_9, %c0_10] : memref<128x128xf32, #tpu.memory_space<vmem>>, vector<128x128xf32>
    %cst_11 = arith.constant dense<0.000000e+00> : vector<16x128xf32>
    %26 = tpu.matmul %24, %25, %cst_11 {dimension_numbers = #tpu.dot_dimension_numbers<[1], [0], [0], [1], [0, 0, 1, 1], [], []>} : vector<16x128xf32>, vector<128x128xf32>, vector<16x128xf32> -> vector<16x128xf32>
    %c0_12 = arith.constant 0 : index
    %c0_13 = arith.constant 0 : index
    %27 = vector.load %arg3[%c0_12, %c0_13] : memref<1x128xf32, #tpu.memory_space<vmem>>, vector<1x128xf32>
    %28 = vector.broadcast %27 : vector<1x128xf32> to vector<16x128xf32>
    %29 = arith.addf %26, %28 : vector<16x128xf32>
    %cst_14 = arith.constant 0.000000e+00 : f32
    %30 = vector.broadcast %cst_14 : f32 to vector<16x128xf32>
    %31 = arith.maximumf %29, %30 : vector<16x128xf32>
    %c0_15 = arith.constant 0 : index
    %c0_16 = arith.constant 0 : index
    %32 = vector.load %arg4[%c0_15, %c0_16] : memref<128x128xf32, #tpu.memory_space<vmem>>, vector<128x128xf32>
    %cst_17 = arith.constant dense<0.000000e+00> : vector<16x128xf32>
    %33 = tpu.matmul %31, %32, %cst_17 {dimension_numbers = #tpu.dot_dimension_numbers<[1], [0], [0], [1], [0, 0, 1, 1], [], []>} : vector<16x128xf32>, vector<128x128xf32>, vector<16x128xf32> -> vector<16x128xf32>
    %c0_18 = arith.constant 0 : index
    %c0_19 = arith.constant 0 : index
    %34 = vector.load %arg5[%c0_18, %c0_19] : memref<1x128xf32, #tpu.memory_space<vmem>>, vector<1x128xf32>
    %35 = vector.broadcast %34 : vector<1x128xf32> to vector<16x128xf32>
    %36 = arith.addf %33, %35 : vector<16x128xf32>
    %cst_20 = arith.constant 1.000000e+00 : f32
    %37 = vector.broadcast %cst_20 : f32 to vector<16x128xf32>
    %38 = arith.mulf %36, %37 : vector<16x128xf32>
    %39 = arith.addf %38, %0 : vector<16x128xf32>
    %c0_21 = arith.constant 0 : index
    %c0_22 = arith.constant 0 : index
    %40 = vector.load %arg8[%c0_21, %c0_22] : memref<16x128xf32, #tpu.memory_space<vmem>>, vector<16x128xf32>
    tpu.vector_store %arg8[%c0_21, %c0_22], %39 {strides = array<i32>} : memref<16x128xf32, #tpu.memory_space<vmem>>, vector<16x128xf32>,
    return
  }
  func.func @transform_0(%arg0: i32) -> (i32, i32) {
    %c0_i32 = arith.constant 0 : i32
    %c0_i32_0 = arith.constant 0 : i32
    return %arg0, %c0_i32 : i32, i32
  }
  func.func @transform_1(%arg0: i32) -> (i32, i32) {
    %c0_i32 = arith.constant 0 : i32
    %c0_i32_0 = arith.constant 0 : i32
    %c0_i32_1 = arith.constant 0 : i32
    return %c0_i32, %c0_i32_0 : i32, i32
  }
  func.func @transform_2(%arg0: i32) -> (i32, i32) {
    %c0_i32 = arith.constant 0 : i32
    %c0_i32_0 = arith.constant 0 : i32
    %c0_i32_1 = arith.constant 0 : i32
    return %c0_i32, %c0_i32_0 : i32, i32
  }
  func.func @transform_3(%arg0: i32) -> (i32, i32) {
    %c0_i32 = arith.constant 0 : i32
    %c0_i32_0 = arith.constant 0 : i32
    %c0_i32_1 = arith.constant 0 : i32
    return %c0_i32, %c0_i32_0 : i32, i32
  }
  func.func @transform_4(%arg0: i32) -> (i32, i32) {
    %c0_i32 = arith.constant 0 : i32
    %c0_i32_0 = arith.constant 0 : i32
    %c0_i32_1 = arith.constant 0 : i32
    return %c0_i32, %c0_i32_0 : i32, i32
  }
  func.func @transform_5(%arg0: i32) -> (i32, i32) {
    %c0_i32 = arith.constant 0 : i32
    %c0_i32_0 = arith.constant 0 : i32
    %c0_i32_1 = arith.constant 0 : i32
    return %c0_i32, %c0_i32_0 : i32, i32
  }
  func.func @transform_6(%arg0: i32) -> (i32, i32) {
    %c0_i32 = arith.constant 0 : i32
    %c0_i32_0 = arith.constant 0 : i32
    %c0_i32_1 = arith.constant 0 : i32
    return %c0_i32, %c0_i32_0 : i32, i32
  }
  func.func @transform_7(%arg0: i32) -> (i32, i32) {
    %c0_i32 = arith.constant 0 : i32
    %c0_i32_0 = arith.constant 0 : i32
    return %arg0, %c0_i32 : i32, i32
  }
}

</mosaic_0001>

<bundles_post_ra>
// kernel: tpu_custom_call.1
= control target key start
LH: loop header
LB: loop body
LE: loop exit
PB: predicated region body
PF: predicated region fallthrough
CT: control target
= control target key end

     0   :  { %12 = vsyncpa [#allocation3], 0  ;;  %s751_s0 = inlined_call_operand.hbm [shape: f32[16,128], index: 0, kind: input, shape index: {}]   ;;  %s752_s1 = inlined_call_operand.hbm [shape: f32[128,128], index: 1, kind: input, shape index: {}]   ;;  %s753_s2 = inlined_call_operand.vmem [shape: f32[1,128], index: 2, kind: input, shape index: {}]   ;;  %s754_s3 = inlined_call_operand.hbm [shape: f32[128,128], index: 3, kind: input, shape index: {}]   ;;  %s755_s4 = inlined_call_operand.vmem [shape: f32[1,128], index: 4, kind: input, shape index: {}]   ;;  %s756_s5 = inlined_call_operand.vmem [shape: f32[1,128], index: 5, kind: input, shape index: {}]   ;;  %s757_s6 = inlined_call_operand.vmem [shape: f32[1,128], index: 6, kind: input, shape index: {}]   ;;  %s758_s7 = inlined_call_operand.hbm [shape: f32[16,128], index: 7, kind: output, shape index: {}]  }
   0x1   :  { %13 = vsyncpa [#allocation6], 0 }
   0x2   :  { %14 = vsyncpa [#allocation4], 0  ;;  %s612_s24 = smov [#allocation5]   ;;  %s613_s26 = smov [#allocation2]  }
   0x3   :  { %s32_s25 = sshll.u32 %s612_s24, 4  ;;  %s20_s27 = sshll.u32 %s613_s26, 4  ;;  %s33_s25 = int_to_ptr.vmem [resolvable:$true] %s32_s25  ;;  %s658_s27 = int_to_ptr.vmem [resolvable:$true] %s20_s27 }
   0x4   :  { %s518_s30 = scalar_lea.hbm %s752_s1, 2048 }
   0x5   :  { %p519_p0 = scmp.ne.s32.totalorder %s752_s1, %s518_s30  ;;  %p522_p1 = scmp.lt.u32.totalorder %s518_s30, %s752_s1 }
   0x7   :  { %p524_p2 = pnand %p522_p1, %p519_p0 }
   0x9   :  { %527 = shalt.err (!%p524_p2)
}
   0xa   :  { %s528_s12 = scalar_lea.vmem %s33_s25, 2048  ;;  %p533_p4 = scmp.lt.s32.totalorder %s33_s25, %s33_s25 }
   0xb   :  { %p529_p3 = scmp.ne.s32.totalorder %s33_s25, %s528_s12  ;;  %p534_p5 = scmp.lt.s32.totalorder %s528_s12, %s528_s12 }
   0xd   :  { %p535_p6 = por %p534_p5, %p533_p4 }
   0xf   :  { %p536_p7 = pnand %p535_p6, %p529_p3 }
  0x11   :  { %539 = shalt.err (!%p536_p7)
}
  0x12   :  { %s614_s13 = smov 128   ;;  %s615_s14 = smov 8  }
  0x13   :  { %38 = dma.hbm_to_vmem [thread:$0]  %s752_s1, 2048, %s33_s25, [#allocation6], %s614_s13, %s614_s13, %s615_s14  }
  0x14   :  { %s540_s19 = scalar_lea.hbm %s751_s0, 256 }
  0x15   :  { %p541_p8 = scmp.ne.s32.totalorder %s751_s0, %s540_s19  ;;  %p544_p9 = scmp.lt.u32.totalorder %s540_s19, %s751_s0 }
  0x17   :  { %p546_p10 = pnand %p544_p9, %p541_p8 }
  0x19   :  { %549 = shalt.err (!%p546_p10)
}
  0x1a   :  { %s550_s24 = scalar_lea.vmem %s658_s27, 256  ;;  %p555_p12 = scmp.lt.s32.totalorder %s658_s27, %s658_s27 }
  0x1b   :  { %p551_p11 = scmp.ne.s32.totalorder %s658_s27, %s550_s24  ;;  %p556_p13 = scmp.lt.s32.totalorder %s550_s24, %s550_s24 }
  0x1d   :  { %p557_p0 = por %p556_p13, %p555_p12 }
  0x1f   :  { %p558_p1 = pnand %p557_p0, %p551_p11 }
  0x21   :  { %561 = shalt.err (!%p558_p1)
}
  0x22   :  { %26 = dma.hbm_to_vmem [thread:$0]  %s751_s0, 256, %s658_s27, [#allocation3], %s614_s13, %s614_s13, %s615_s14  }
  0x23   :  { %s616_s26 = smov [#allocation7]   ;;  %s562_s8 = scalar_lea.hbm %s754_s3, 2048 }
  0x24   :  { %s46_s28 = sshll.u32 %s616_s26, 4  ;;  %p563_p2 = scmp.ne.s32.totalorder %s754_s3, %s562_s8  ;;  %s47_s28 = int_to_ptr.vmem [resolvable:$true] %s46_s28 }
  0x25   :  { %p566_p3 = scmp.lt.u32.totalorder %s562_s8, %s754_s3 }
  0x27   :  { %p568_p4 = pnand %p566_p3, %p563_p2 }
  0x29   :  { %571 = shalt.err (!%p568_p4)
}
  0x2a   :  { %s572_s15 = scalar_lea.vmem %s47_s28, 2048  ;;  %p577_p6 = scmp.lt.s32.totalorder %s47_s28, %s47_s28 }
  0x2b   :  { %p573_p5 = scmp.ne.s32.totalorder %s47_s28, %s572_s15  ;;  %p578_p7 = scmp.lt.s32.totalorder %s572_s15, %s572_s15 }
  0x2d   :  { %p579_p8 = por %p578_p7, %p577_p6 }
  0x2f   :  { %p580_p9 = pnand %p579_p8, %p573_p5 }
  0x31   :  { %583 = shalt.err (!%p580_p9)
}
  0x32   :  { %52 = dma.hbm_to_vmem [thread:$0]  %s754_s3, 2048, %s47_s28, [#allocation6], %s614_s13, %s614_s13, %s615_s14  }
  0x33   :  { %606 = dma.done.wait [#allocation3], 256  }
  0x34   :  { %607 = vsyncadd [#allocation3], 4294967040 }
  0x35   :  { %608 = dma.done.wait [#allocation6], 4096  }
  0x36   :  { %609 = vsyncadd [#allocation6], 4294963200  ;;  %v710_v0 = vld [vmem:[#allocation2] sm:$0xff]  ;;  %v712_v1 = vld [vmem:[#allocation2 + $0x8] sm:$0xff]  ;;  %s617_s21 = smov [#allocation8]  }
  0x37   :  { %v114_v2 = vld [vmem:[#allocation5] sm:$0xff]  ;;  %70 = vadd.xlane.f32.xlu0 %v710_v0  ;;  %v76_v3 = vmul.f32 %v710_v0, %v710_v0  ;;  %v115_v4 = vld [vmem:[#allocation5 + $0x8] sm:$0xff]  ;;  %v77_v6 = vmul.f32 %v712_v1, %v712_v1  ;;  %v116_v7 = vld [vmem:[#allocation5 + $0x10] sm:$0xff]  ;;  %s321_s22 = sshll.u32 %s617_s21, 4  ;;  %s322_s22 = int_to_ptr.vmem [resolvable:$true] %s321_s22 }
  0x38   :  { %v444_v5 = vpack.c.bf16 %v115_v4, %v114_v2  ;;  %v117_v8 = vld [vmem:[#allocation5 + $0x18] sm:$0xff]  ;;  %v118_v10 = vld [vmem:[#allocation5 + $0x20] sm:$0xff]  ;;  %v119_v11 = vld [vmem:[#allocation5 + $0x28] sm:$0xff]  ;;  %p589_p11 = scmp.lt.s32.totalorder %s322_s22, %s322_s22 }
  0x39   :  { %78 = vadd.xlane.f32.xlu1 %v76_v3  ;;  %v448_v9 = vpack.c.bf16 %v117_v8, %v116_v7  ;;  %v452_v12 = vpack.c.bf16 %v119_v11, %v118_v10  ;;  %v120_v13 = vld [vmem:[#allocation5 + $0x30] sm:$0xff]  ;;  %v121_v14 = vld [vmem:[#allocation5 + $0x38] sm:$0xff]  ;;  %v122_v16 = vld [vmem:[#allocation5 + $0x40] sm:$0xff] }
  0x3a   :  { %445 = vmatprep.subr.bf16.mxu0 %v444_v5  ;;  %v456_v15 = vpack.c.bf16 %v121_v14, %v120_v13  ;;  %v123_v17 = vld [vmem:[#allocation5 + $0x48] sm:$0xff]  ;;  %v124_v19 = vld [vmem:[#allocation5 + $0x50] sm:$0xff]  ;;  %v125_v20 = vld [vmem:[#allocation5 + $0x58] sm:$0xff] }
  0x3b   :  { %72 = vadd.xlane.f32.xlu0 %v712_v1  ;;  %447 = vmatpush3.bf16.msra.mxu0 %v444_v5  ;;  %v460_v18 = vpack.c.bf16 %v123_v17, %v122_v16  ;;  %v126_v21 = vld [vmem:[#allocation5 + $0x60] sm:$0xff]  ;;  %v464_v22 = vpack.c.bf16 %v125_v20, %v124_v19  ;;  %v127_v23 = vld [vmem:[#allocation5 + $0x68] sm:$0xff]  ;;  %v128_v25 = vld [vmem:[#allocation5 + $0x70] sm:$0xff] }
  0x3c   :  { %449 = vmatprep.subr.bf16.mxu0 %v448_v9  ;;  %v468_v24 = vpack.c.bf16 %v127_v23, %v126_v21  ;;  %v129_v26 = vld [vmem:[#allocation5 + $0x78] sm:$0xff]  ;;  %v214_v28 = vld [vmem:[#allocation7] sm:$0xff]  ;;  %v215_v29 = vld [vmem:[#allocation7 + $0x8] sm:$0xff] }
  0x3d   :  { %80 = vadd.xlane.f32.xlu1 %v77_v6  ;;  %v472_v27 = vpack.c.bf16 %v129_v26, %v128_v25  ;;  %v216_v30 = vld [vmem:[#allocation7 + $0x10] sm:$0xff]  ;;  %v476_v31 = vpack.c.bf16 %v215_v29, %v214_v28  ;;  %v217_v32 = vld [vmem:[#allocation7 + $0x18] sm:$0xff]  ;;  %v218_v34 = vld [vmem:[#allocation7 + $0x20] sm:$0xff] }
  0x3e   :  { %v480_v33 = vpack.c.bf16 %v217_v32, %v216_v30  ;;  %v219_v35 = vld [vmem:[#allocation7 + $0x28] sm:$0xff]  ;;  %v220_v37 = vld [vmem:[#allocation7 + $0x30] sm:$0xff]  ;;  %v221_v38 = vld [vmem:[#allocation7 + $0x38] sm:$0xff] }
  0x3f   :  { %451 = vmatpush3.bf16.msra.mxu0 %v448_v9  ;;  %477 = vmatprep.subr.bf16.mxu1 %v476_v31  ;;  %v484_v36 = vpack.c.bf16 %v219_v35, %v218_v34  ;;  %v488_v39 = vpack.c.bf16 %v221_v38, %v220_v37  ;;  %v222_v40 = vld [vmem:[#allocation7 + $0x40] sm:$0xff]  ;;  %v223_v41 = vld [vmem:[#allocation7 + $0x48] sm:$0xff]  ;;  %v224_v43 = vld [vmem:[#allocation7 + $0x50] sm:$0xff] }
  0x40   :  { %453 = vmatprep.subr.bf16.mxu0 %v452_v12  ;;  %479 = vmatpush3.bf16.msra.mxu1 %v476_v31  ;;  %v492_v42 = vpack.c.bf16 %v223_v41, %v222_v40  ;;  %v225_v44 = vld [vmem:[#allocation7 + $0x58] sm:$0xff]  ;;  %v226_v46 = vld [vmem:[#allocation7 + $0x60] sm:$0xff]  ;;  %v227_v47 = vld [vmem:[#allocation7 + $0x68] sm:$0xff] }
  0x41   :  { %481 = vmatprep.subr.bf16.mxu1 %v480_v33  ;;  %v496_v45 = vpack.c.bf16 %v225_v44, %v224_v43  ;;  %v500_v48 = vpack.c.bf16 %v227_v47, %v226_v46  ;;  %v334_v3 = vld [vmem:[%s756_s5] ss:$0 sm:$0xff]  ;;  %v229_v14 = vld [vmem:[#allocation7 + $0x78] sm:$0xff] }
  0x42   :  { %v335_v5 = vld [vmem:[%s757_s6] ss:$0 sm:$0xff] }
  0x43   :  { %455 = vmatpush3.bf16.msra.mxu0 %v452_v12  ;;  %v228_v13 = vld [vmem:[#allocation7 + $0x70] sm:$0xff] }
  0x44   :  { %457 = vmatprep.subr.bf16.mxu0 %v456_v15  ;;  %483 = vmatpush3.bf16.msra.mxu1 %v480_v33  ;;  %v336_v16 = vld [vmem:[%s753_s2] ss:$0 sm:$0xff]  ;;  %s584_s2 = scalar_lea.vmem %s322_s22, 256 }
  0x45   :  { %485 = vmatprep.subr.bf16.mxu1 %v484_v36  ;;  %v337_v23 = vld [vmem:[%s755_s4] ss:$0 sm:$0xff]  ;;  %p585_p10 = scmp.ne.s32.totalorder %s322_s22, %s584_s2  ;;  %p590_p12 = scmp.lt.s32.totalorder %s584_s2, %s584_s2 }
  0x47   :  { %459 = vmatpush3.bf16.msra.mxu0 %v456_v15  ;;  %v504_v15 = vpack.c.bf16 %v229_v14, %v228_v13  ;;  %p591_p13 = por %p590_p12, %p589_p11 }
  0x48   :  { %461 = vmatprep.subr.bf16.mxu0 %v460_v18  ;;  %487 = vmatpush3.bf16.msra.mxu1 %v484_v36 }
  0x49   :  { %489 = vmatprep.subr.bf16.mxu1 %v488_v39  ;;  %p592_p0 = pnand %p591_p13, %p585_p10 }
  0x4b   :  { %463 = vmatpush3.bf16.msra.mxu0 %v460_v18 }
  0x4c   :  { %465 = vmatprep.subr.bf16.mxu0 %v464_v22  ;;  %491 = vmatpush3.bf16.msra.mxu1 %v488_v39 }
  0x4d   :  { %493 = vmatprep.subr.bf16.mxu1 %v492_v42 }
  0x4f   :  { %467 = vmatpush3.bf16.msra.mxu0 %v464_v22 }
  0x50   :  { %469 = vmatprep.subr.bf16.mxu0 %v468_v24  ;;  %495 = vmatpush3.bf16.msra.mxu1 %v492_v42 }
  0x51   :  { %497 = vmatprep.subr.bf16.mxu1 %v496_v45 }
  0x53   :  { %471 = vmatpush3.bf16.msra.mxu0 %v468_v24 }
  0x54   :  { %473 = vmatprep.subr.bf16.mxu0 %v472_v27  ;;  %499 = vmatpush3.bf16.msra.mxu1 %v496_v45 }
  0x55   :  { %501 = vmatprep.subr.bf16.mxu1 %v500_v48 }
  0x57   :  { %475 = vmatpush3.bf16.msra.mxu0 %v472_v27 }
  0x58   :  { %503 = vmatpush3.bf16.msra.mxu1 %v500_v48 }
  0x59   :  { %505 = vmatprep.subr.bf16.mxu1 %v504_v15 }
  0x5c   :  { %507 = vmatpush3.bf16.msra.mxu1 %v504_v15 }
  0xc4   :  { %v71_v49 = vpop.xlane.xlu0 %70 }
  0xc5   :  { %v74_v50 = vmul.f32 0.03125, %v71_v49 }
  0xc6   :  { %v79_v51 = vpop.xlane.xlu1 %78 }
  0xc7   :  { %v84_v52 = vmul.f32 %v74_v50, %v74_v50  ;;  %v82_v53 = vmul.f32 0.03125, %v79_v51  ;;  %v88_v63 = vsub.f32 %v710_v0, %v74_v50 }
  0xc8   :  { %v73_v54 = vpop.xlane.xlu0 %72 }
  0xc9   :  { %v86_v55 = vsub.f32 %v82_v53, %v84_v52  ;;  %v75_v56 = vmul.f32 0.03125, %v73_v54 }
  0xca   :  { %v81_v57 = vpop.xlane.xlu1 %80 }
  0xcb   :  { %v90_v58 = vadd.f32 1e-05, %v86_v55  ;;  %v85_v59 = vmul.f32 %v75_v56, %v75_v56  ;;  %v83_v60 = vmul.f32 0.03125, %v81_v57  ;;  %v89_v6 = vsub.f32 %v712_v1, %v75_v56 }
  0xcd   :  { %514 = vrsqrt.f32 %v90_v58  ;;  %v87_v61 = vsub.f32 %v83_v60, %v85_v59 }
  0xcf   :  { %v91_v62 = vadd.f32 1e-05, %v87_v61 }
  0xd1   :  { %516 = vrsqrt.f32 %v91_v62 }
  0xd7   :  { %v515_v2 = vpop.eup %514 }
  0xd8   :  { %v94_v4 = vmul.f32 %v515_v2, %v88_v63 }
  0xda   :  { %v103_v7 = vmul.f32 %v334_v3, %v94_v4 }
  0xdb   :  { %v517_v8 = vpop.eup %516 }
  0xdc   :  { %v95_v9 = vmul.f32 %v517_v8, %v89_v6  ;;  %v112_v10 = vadd.f32 %v335_v5, %v103_v7 }
  0xde   :  { %v104_v11 = vmul.f32 %v334_v3, %v95_v9  ;;  %406 = vmatprep.mubr.f32.mxu0 %v112_v10 }
  0xe0   :  { %v113_v12 = vadd.f32 %v335_v5, %v104_v11 }
  0xe2   :  { %407 = vmatmul.mubr.f32.vlgmr.msra.gmra.mrb[0].mxu0 %v113_v12 }
 0x1b5   :  { %v408_v17 = vpop.f32.mrb[0].mxu0 }
 0x1b6   :  { %v209_v18 = vadd.f32 %v408_v17, %v336_v16  ;;  %v203_v19 = vpop.f32.mrb[1].mxu0 }
 0x1b7   :  { %v204_v20 = vadd.f32 %v336_v16, %v203_v19 }
 0x1b8   :  { %v213_v22 = vmax.f32 %v209_v18, 0.0 }
 0x1b9   :  { %v212_v21 = vmax.f32 %v204_v20, 0.0 }
 0x1bb   :  { %441 = vmatprep.mubr.f32.mxu1 %v212_v21 }
 0x1bc   :  { %442 = vmatmul.mubr.f32.vlgmr.msra.gmra.mrb[0].mxu1 %v213_v22 }
 0x28f   :  { %v443_v24 = vpop.f32.mrb[0].mxu1 }
 0x290   :  { %v309_v25 = vadd.f32 %v443_v24, %v337_v23  ;;  %v303_v26 = vpop.f32.mrb[1].mxu1 }
 0x291   :  { %v304_v27 = vadd.f32 %v337_v23, %v303_v26 }
 0x292   :  { %v313_v28 = vadd.f32 %v309_v25, %v712_v1 }
 0x293   :  { %v312_v29 = vadd.f32 %v304_v27, %v710_v0 }
 0x294   :  { %315 = vst [vmem:[#allocation8 + $0x8] sm:$0xff] %v313_v28 }
 0x295   :  { %314 = vst [vmem:[#allocation8] sm:$0xff] %v312_v29 }
 0x296   :  { %595 = shalt.err (!%p592_p0)
}
 0x297   :  { %s596_s24 = scalar_lea.hbm %s758_s7, 256 }
 0x298   :  { %p597_p1 = scmp.ne.s32.totalorder %s758_s7, %s596_s24  ;;  %p600_p2 = scmp.lt.u32.totalorder %s596_s24, %s758_s7 }
 0x29a   :  { %p602_p3 = pnand %p600_p2, %p597_p1 }
 0x29c   :  { %605 = shalt.err (!%p602_p3)
}
 0x29d   :  { %327 = dma.vmem_to_hbm [thread:$0]  %s322_s22, 256, %s758_s7, [#allocation4], %s614_s13, %s614_s13, %s615_s14  }
 0x29e   :  { %610 = dma.done.wait [#allocation4], 256  }
 0x29f   :  { %611 = vsyncadd [#allocation4], 4294967040 }
 0x2a0   :  { %331 = vsyncpa [#allocation3], 1 }
 0x2a1   :  { %332 = vsyncpa [#allocation6], 1 }
 0x2a2   :  { %333 = vsyncpa [#allocation4], 1 }

// kernel: tpu_custom_call.1
= control target key start
LH: loop header
LB: loop body
LE: loop exit
PB: predicated region body
PF: predicated region fallthrough
CT: control target
= control target key end

     0   :  { %12 = vsyncpa [#allocation3], 0  ;;  %s751_s0 = inlined_call_operand.hbm [shape: f32[16,128], index: 0, kind: input, shape index: {}]   ;;  %s752_s1 = inlined_call_operand.hbm [shape: f32[128,128], index: 1, kind: input, shape index: {}]   ;;  %s753_s2 = inlined_call_operand.vmem [shape: f32[1,128], index: 2, kind: input, shape index: {}]   ;;  %s754_s3 = inlined_call_operand.hbm [shape: f32[128,128], index: 3, kind: input, shape index: {}]   ;;  %s755_s4 = inlined_call_operand.vmem [shape: f32[1,128], index: 4, kind: input, shape index: {}]   ;;  %s756_s5 = inlined_call_operand.vmem [shape: f32[1,128], index: 5, kind: input, shape index: {}]   ;;  %s757_s6 = inlined_call_operand.vmem [shape: f32[1,128], index: 6, kind: input, shape index: {}]   ;;  %s758_s7 = inlined_call_operand.hbm [shape: f32[16,128], index: 7, kind: output, shape index: {}]  }
   0x1   :  { %13 = vsyncpa [#allocation6], 0 }
   0x2   :  { %14 = vsyncpa [#allocation4], 0  ;;  %s612_s24 = smov [#allocation5]   ;;  %s613_s26 = smov [#allocation2]  }
   0x3   :  { %s32_s25 = sshll.u32 %s612_s24, 4  ;;  %s20_s27 = sshll.u32 %s613_s26, 4  ;;  %s33_s25 = int_to_ptr.vmem [resolvable:$true] %s32_s25  ;;  %s658_s27 = int_to_ptr.vmem [resolvable:$true] %s20_s27 }
   0x4   :  { %s518_s30 = scalar_lea.hbm %s752_s1, 2048 }
   0x5   :  { %p519_p0 = scmp.ne.s32.totalorder %s752_s1, %s518_s30  ;;  %p522_p1 = scmp.lt.u32.totalorder %s518_s30, %s752_s1 }
   0x7   :  { %p524_p2 = pnand %p522_p1, %p519_p0 }
   0x9   :  { %527 = shalt.err (!%p524_p2)
}
   0xa   :  { %s528_s12 = scalar_lea.vmem %s33_s25, 2048  ;;  %p533_p4 = scmp.lt.s32.totalorder %s33_s25, %s33_s25 }
   0xb   :  { %p529_p3 = scmp.ne.s32.totalorder %s33_s25, %s528_s12  ;;  %p534_p5 = scmp.lt.s32.totalorder %s528_s12, %s528_s12 }
   0xd   :  { %p535_p6 = por %p534_p5, %p533_p4 }
   0xf   :  { %p536_p7 = pnand %p535_p6, %p529_p3 }
  0x11   :  { %539 = shalt.err (!%p536_p7)
}
  0x12   :  { %s614_s13 = smov 128   ;;  %s615_s14 = smov 8  }
  0x13   :  { %38 = dma.hbm_to_vmem [thread:$0]  %s752_s1, 2048, %s33_s25, [#allocation6], %s614_s13, %s614_s13, %s615_s14  }
  0x14   :  { %s540_s19 = scalar_lea.hbm %s751_s0, 256 }
  0x15   :  { %p541_p8 = scmp.ne.s32.totalorder %s751_s0, %s540_s19  ;;  %p544_p9 = scmp.lt.u32.totalorder %s540_s19, %s751_s0 }
  0x17   :  { %p546_p10 = pnand %p544_p9, %p541_p8 }
  0x19   :  { %549 = shalt.err (!%p546_p10)
}
  0x1a   :  { %s550_s24 = scalar_lea.vmem %s658_s27, 256  ;;  %p555_p12 = scmp.lt.s32.totalorder %s658_s27, %s658_s27 }
  0x1b   :  { %p551_p11 = scmp.ne.s32.totalorder %s658_s27, %s550_s24  ;;  %p556_p13 = scmp.lt.s32.totalorder %s550_s24, %s550_s24 }
  0x1d   :  { %p557_p0 = por %p556_p13, %p555_p12 }
  0x1f   :  { %p558_p1 = pnand %p557_p0, %p551_p11 }
  0x21   :  { %561 = shalt.err (!%p558_p1)
}
  0x22   :  { %26 = dma.hbm_to_vmem [thread:$0]  %s751_s0, 256, %s658_s27, [#allocation3], %s614_s13, %s614_s13, %s615_s14  }
  0x23   :  { %s616_s26 = smov [#allocation7]   ;;  %s562_s8 = scalar_lea.hbm %s754_s3, 2048 }
  0x24   :  { %s46_s28 = sshll.u32 %s616_s26, 4  ;;  %p563_p2 = scmp.ne.s32.totalorder %s754_s3, %s562_s8  ;;  %s47_s28 = int_to_ptr.vmem [resolvable:$true] %s46_s28 }
  0x25   :  { %p566_p3 = scmp.lt.u32.totalorder %s562_s8, %s754_s3 }
  0x27   :  { %p568_p4 = pnand %p566_p3, %p563_p2 }
  0x29   :  { %571 = shalt.err (!%p568_p4)
}
  0x2a   :  { %s572_s15 = scalar_lea.vmem %s47_s28, 2048  ;;  %p577_p6 = scmp.lt.s32.totalorder %s47_s28, %s47_s28 }
  0x2b   :  { %p573_p5 = scmp.ne.s32.totalorder %s47_s28, %s572_s15  ;;  %p578_p7 = scmp.lt.s32.totalorder %s572_s15, %s572_s15 }
  0x2d   :  { %p579_p8 = por %p578_p7, %p577_p6 }
  0x2f   :  { %p580_p9 = pnand %p579_p8, %p573_p5 }
  0x31   :  { %583 = shalt.err (!%p580_p9)
}
  0x32   :  { %52 = dma.hbm_to_vmem [thread:$0]  %s754_s3, 2048, %s47_s28, [#allocation6], %s614_s13, %s614_s13, %s615_s14  }
  0x33   :  { %606 = dma.done.wait [#allocation3], 256  }
  0x34   :  { %607 = vsyncadd [#allocation3], 4294967040 }
  0x35   :  { %608 = dma.done.wait [#allocation6], 4096  }
  0x36   :  { %609 = vsyncadd [#allocation6], 4294963200  ;;  %v710_v0 = vld [vmem:[#allocation2] sm:$0xff]  ;;  %v712_v1 = vld [vmem:[#allocation2 + $0x8] sm:$0xff]  ;;  %s617_s21 = smov [#allocation8]  }
  0x37   :  { %v114_v2 = vld [vmem:[#allocation5] sm:$0xff]  ;;  %70 = vadd.xlane.f32.xlu0 %v710_v0  ;;  %v76_v3 = vmul.f32 %v710_v0, %v710_v0  ;;  %v115_v4 = vld [vmem:[#allocation5 + $0x8] sm:$0xff]  ;;  %v77_v6 = vmul.f32 %v712_v1, %v712_v1  ;;  %v116_v7 = vld [vmem:[#allocation5 + $0x10] sm:$0xff]  ;;  %s321_s22 = sshll.u32 %s617_s21, 4  ;;  %s322_s22 = int_to_ptr.vmem [resolvable:$true] %s321_s22 }
  0x38   :  { %v444_v5 = vpack.c.bf16 %v115_v4, %v114_v2  ;;  %v117_v8 = vld [vmem:[#allocation5 + $0x18] sm:$0xff]  ;;  %v118_v10 = vld [vmem:[#allocation5 + $0x20] sm:$0xff]  ;;  %v119_v11 = vld [vmem:[#allocation5 + $0x28] sm:$0xff]  ;;  %p589_p11 = scmp.lt.s32.totalorder %s322_s22, %s322_s22 }
  0x39   :  { %78 = vadd.xlane.f32.xlu1 %v76_v3  ;;  %v448_v9 = vpack.c.bf16 %v117_v8, %v116_v7  ;;  %v452_v12 = vpack.c.bf16 %v119_v11, %v118_v10  ;;  %v120_v13 = vld [vmem:[#allocation5 + $0x30] sm:$0xff]  ;;  %v121_v14 = vld [vmem:[#allocation5 + $0x38] sm:$0xff]  ;;  %v122_v16 = vld [vmem:[#allocation5 + $0x40] sm:$0xff] }
  0x3a   :  { %445 = vmatprep.subr.bf16.mxu0 %v444_v5  ;;  %v456_v15 = vpack.c.bf16 %v121_v14, %v120_v13  ;;  %v123_v17 = vld [vmem:[#allocation5 + $0x48] sm:$0xff]  ;;  %v124_v19 = vld [vmem:[#allocation5 + $0x50] sm:$0xff]  ;;  %v125_v20 = vld [vmem:[#allocation5 + $0x58] sm:$0xff] }
  0x3b   :  { %72 = vadd.xlane.f32.xlu0 %v712_v1  ;;  %447 = vmatpush3.bf16.msra.mxu0 %v444_v5  ;;  %v460_v18 = vpack.c.bf16 %v123_v17, %v122_v16  ;;  %v126_v21 = vld [vmem:[#allocation5 + $0x60] sm:$0xff]  ;;  %v464_v22 = vpack.c.bf16 %v125_v20, %v124_v19  ;;  %v127_v23 = vld [vmem:[#allocation5 + $0x68] sm:$0xff]  ;;  %v128_v25 = vld [vmem:[#allocation5 + $0x70] sm:$0xff] }
  0x3c   :  { %449 = vmatprep.subr.bf16.mxu0 %v448_v9  ;;  %v468_v24 = vpack.c.bf16 %v127_v23, %v126_v21  ;;  %v129_v26 = vld [vmem:[#allocation5 + $0x78] sm:$0xff]  ;;  %v214_v28 = vld [vmem:[#allocation7] sm:$0xff]  ;;  %v215_v29 = vld [vmem:[#allocation7 + $0x8] sm:$0xff] }
  0x3d   :  { %80 = vadd.xlane.f32.xlu1 %v77_v6  ;;  %v472_v27 = vpack.c.bf16 %v129_v26, %v128_v25  ;;  %v216_v30 = vld [vmem:[#allocation7 + $0x10] sm:$0xff]  ;;  %v476_v31 = vpack.c.bf16 %v215_v29, %v214_v28  ;;  %v217_v32 = vld [vmem:[#allocation7 + $0x18] sm:$0xff]  ;;  %v218_v34 = vld [vmem:[#allocation7 + $0x20] sm:$0xff] }
  0x3e   :  { %v480_v33 = vpack.c.bf16 %v217_v32, %v216_v30  ;;  %v219_v35 = vld [vmem:[#allocation7 + $0x28] sm:$0xff]  ;;  %v220_v37 = vld [vmem:[#allocation7 + $0x30] sm:$0xff]  ;;  %v221_v38 = vld [vmem:[#allocation7 + $0x38] sm:$0xff] }
  0x3f   :  { %451 = vmatpush3.bf16.msra.mxu0 %v448_v9  ;;  %477 = vmatprep.subr.bf16.mxu1 %v476_v31  ;;  %v484_v36 = vpack.c.bf16 %v219_v35, %v218_v34  ;;  %v488_v39 = vpack.c.bf16 %v221_v38, %v220_v37  ;;  %v222_v40 = vld [vmem:[#allocation7 + $0x40] sm:$0xff]  ;;  %v223_v41 = vld [vmem:[#allocation7 + $0x48] sm:$0xff]  ;;  %v224_v43 = vld [vmem:[#allocation7 + $0x50] sm:$0xff] }
  0x40   :  { %453 = vmatprep.subr.bf16.mxu0 %v452_v12  ;;  %479 = vmatpush3.bf16.msra.mxu1 %v476_v31  ;;  %v492_v42 = vpack.c.bf16 %v223_v41, %v222_v40  ;;  %v225_v44 = vld [vmem:[#allocation7 + $0x58] sm:$0xff]  ;;  %v226_v46 = vld [vmem:[#allocation7 + $0x60] sm:$0xff]  ;;  %v227_v47 = vld [vmem:[#allocation7 + $0x68] sm:$0xff] }
  0x41   :  { %481 = vmatprep.subr.bf16.mxu1 %v480_v33  ;;  %v496_v45 = vpack.c.bf16 %v225_v44, %v224_v43  ;;  %v500_v48 = vpack.c.bf16 %v227_v47, %v226_v46  ;;  %v334_v3 = vld [vmem:[%s756_s5] ss:$0 sm:$0xff]  ;;  %v229_v14 = vld [vmem:[#allocation7 + $0x78] sm:$0xff] }
  0x42   :  { %v335_v5 = vld [vmem:[%s757_s6] ss:$0 sm:$0xff] }
  0x43   :  { %455 = vmatpush3.bf16.msra.mxu0 %v452_v12  ;;  %v228_v13 = vld [vmem:[#allocation7 + $0x70] sm:$0xff] }
  0x44   :  { %457 = vmatprep.subr.bf16.mxu0 %v456_v15  ;;  %483 = vmatpush3.bf16.msra.mxu1 %v480_v33  ;;  %v336_v16 = vld [vmem:[%s753_s2] ss:$0 sm:$0xff]  ;;  %s584_s2 = scalar_lea.vmem %s322_s22, 256 }
  0x45   :  { %485 = vmatprep.subr.bf16.mxu1 %v484_v36  ;;  %v337_v23 = vld [vmem:[%s755_s4] ss:$0 sm:$0xff]  ;;  %p585_p10 = scmp.ne.s32.totalorder %s322_s22, %s584_s2  ;;  %p590_p12 = scmp.lt.s32.totalorder %s584_s2, %s584_s2 }
  0x47   :  { %459 = vmatpush3.bf16.msra.mxu0 %v456_v15  ;;  %v504_v15 = vpack.c.bf16 %v229_v14, %v228_v13  ;;  %p591_p13 = por %p590_p12, %p589_p11 }
  0x48   :  { %461 = vmatprep.subr.bf16.mxu0 %v460_v18  ;;  %487 = vmatpush3.bf16.msra.mxu1 %v484_v36 }
  0x49   :  { %489 = vmatprep.subr.bf16.mxu1 %v488_v39  ;;  %p592_p0 = pnand %p591_p13, %p585_p10 }
  0x4b   :  { %463 = vmatpush3.bf16.msra.mxu0 %v460_v18 }
  0x4c   :  { %465 = vmatprep.subr.bf16.mxu0 %v464_v22  ;;  %491 = vmatpush3.bf16.msra.mxu1 %v488_v39 }
  0x4d   :  { %493 = vmatprep.subr.bf16.mxu1 %v492_v42 }
  0x4f   :  { %467 = vmatpush3.bf16.msra.mxu0 %v464_v22 }
  0x50   :  { %469 = vmatprep.subr.bf16.mxu0 %v468_v24  ;;  %495 = vmatpush3.bf16.msra.mxu1 %v492_v42 }
  0x51   :  { %497 = vmatprep.subr.bf16.mxu1 %v496_v45 }
  0x53   :  { %471 = vmatpush3.bf16.msra.mxu0 %v468_v24 }
  0x54   :  { %473 = vmatprep.subr.bf16.mxu0 %v472_v27  ;;  %499 = vmatpush3.bf16.msra.mxu1 %v496_v45 }
  0x55   :  { %501 = vmatprep.subr.bf16.mxu1 %v500_v48 }
  0x57   :  { %475 = vmatpush3.bf16.msra.mxu0 %v472_v27 }
  0x58   :  { %503 = vmatpush3.bf16.msra.mxu1 %v500_v48 }
  0x59   :  { %505 = vmatprep.subr.bf16.mxu1 %v504_v15 }
  0x5c   :  { %507 = vmatpush3.bf16.msra.mxu1 %v504_v15 }
  0xc4   :  { %v71_v49 = vpop.xlane.xlu0 %70 }
  0xc5   :  { %v74_v50 = vmul.f32 0.03125, %v71_v49 }
  0xc6   :  { %v79_v51 = vpop.xlane.xlu1 %78 }
  0xc7   :  { %v84_v52 = vmul.f32 %v74_v50, %v74_v50  ;;  %v82_v53 = vmul.f32 0.03125, %v79_v51  ;;  %v88_v63 = vsub.f32 %v710_v0, %v74_v50 }
  0xc8   :  { %v73_v54 = vpop.xlane.xlu0 %72 }
  0xc9   :  { %v86_v55 = vsub.f32 %v82_v53, %v84_v52  ;;  %v75_v56 = vmul.f32 0.03125, %v73_v54 }
  0xca   :  { %v81_v57 = vpop.xlane.xlu1 %80 }
  0xcb   :  { %v90_v58 = vadd.f32 1e-05, %v86_v55  ;;  %v85_v59 = vmul.f32 %v75_v56, %v75_v56  ;;  %v83_v60 = vmul.f32 0.03125, %v81_v57  ;;  %v89_v6 = vsub.f32 %v712_v1, %v75_v56 }
  0xcd   :  { %514 = vrsqrt.f32 %v90_v58  ;;  %v87_v61 = vsub.f32 %v83_v60, %v85_v59 }
  0xcf   :  { %v91_v62 = vadd.f32 1e-05, %v87_v61 }
  0xd1   :  { %516 = vrsqrt.f32 %v91_v62 }
  0xd7   :  { %v515_v2 = vpop.eup %514 }
  0xd8   :  { %v94_v4 = vmul.f32 %v515_v2, %v88_v63 }
  0xda   :  { %v103_v7 = vmul.f32 %v334_v3, %v94_v4 }
  0xdb   :  { %v517_v8 = vpop.eup %516 }
  0xdc   :  { %v95_v9 = vmul.f32 %v517_v8, %v89_v6  ;;  %v112_v10 = vadd.f32 %v335_v5, %v103_v7 }
  0xde   :  { %v104_v11 = vmul.f32 %v334_v3, %v95_v9  ;;  %406 = vmatprep.mubr.f32.mxu0 %v112_v10 }
  0xe0   :  { %v113_v12 = vadd.f32 %v335_v5, %v104_v11 }
  0xe2   :  { %407 = vmatmul.mubr.f32.vlgmr.msra.gmra.mrb[0].mxu0 %v113_v12 }
 0x1b5   :  { %v408_v17 = vpop.f32.mrb[0].mxu0 }
 0x1b6   :  { %v209_v18 = vadd.f32 %v408_v17, %v336_v16  ;;  %v203_v19 = vpop.f32.mrb[1].mxu0 }
 0x1b7   :  { %v204_v20 = vadd.f32 %v336_v16, %v203_v19 }
 0x1b8   :  { %v213_v22 = vmax.f32 %v209_v18, 0.0 }
 0x1b9   :  { %v212_v21 = vmax.f32 %v204_v20, 0.0 }
 0x1bb   :  { %441 = vmatprep.mubr.f32.mxu1 %v212_v21 }
 0x1bc   :  { %442 = vmatmul.mubr.f32.vlgmr.msra.gmra.mrb[0].mxu1 %v213_v22 }
 0x28f   :  { %v443_v24 = vpop.f32.mrb[0].mxu1 }
 0x290   :  { %v309_v25 = vadd.f32 %v443_v24, %v337_v23  ;;  %v303_v26 = vpop.f32.mrb[1].mxu1 }
 0x291   :  { %v304_v27 = vadd.f32 %v337_v23, %v303_v26 }
 0x292   :  { %v313_v28 = vadd.f32 %v309_v25, %v712_v1 }
 0x293   :  { %v312_v29 = vadd.f32 %v304_v27, %v710_v0 }
 0x294   :  { %315 = vst [vmem:[#allocation8 + $0x8] sm:$0xff] %v313_v28 }
 0x295   :  { %314 = vst [vmem:[#allocation8] sm:$0xff] %v312_v29 }
 0x296   :  { %595 = shalt.err (!%p592_p0)
}
 0x297   :  { %s596_s24 = scalar_lea.hbm %s758_s7, 256 }
 0x298   :  { %p597_p1 = scmp.ne.s32.totalorder %s758_s7, %s596_s24  ;;  %p600_p2 = scmp.lt.u32.totalorder %s596_s24, %s758_s7 }
 0x29a   :  { %p602_p3 = pnand %p600_p2, %p597_p1 }
 0x29c   :  { %605 = shalt.err (!%p602_p3)
}
 0x29d   :  { %327 = dma.vmem_to_hbm [thread:$0]  %s322_s22, 256, %s758_s7, [#allocation4], %s614_s13, %s614_s13, %s615_s14  }
 0x29e   :  { %610 = dma.done.wait [#allocation4], 256  }
 0x29f   :  { %611 = vsyncadd [#allocation4], 4294967040 }
 0x2a0   :  { %331 = vsyncpa [#allocation3], 1 }
 0x2a1   :  { %332 = vsyncpa [#allocation6], 1 }
 0x2a2   :  { %333 = vsyncpa [#allocation4], 1 }

</bundles_post_ra>
